<compile_context>
chip_gen: v7x
topology: tpu7x:2x2x1
jax: 0.10.0
libtpu: 0.0.40
codegen_flags: <defaults>
</compile_context>

<pallas_src>
import jax
import jax.numpy as jnp
from jax.experimental import pallas as pl
from jax.experimental.pallas import tpu as pltpu


def img2seq_kernel(patches_ref, w_ref, pos_bias_ref, out_ref):
    # patches_ref : (Bt, N, P)   bf16
    # w_ref       : (P, Dp)      bf16   (grid-invariant, stays resident)
    # pos_bias_ref: (N, Dp)      f32    (pos_embedding[1:] + bias, padded)
    # out_ref     : (Bt, N, Dp)  f32
    bt, n, p = patches_ref.shape
    dp = w_ref.shape[1]
    # Merge (Bt, N) so the MXU sees one (Bt*N, P) @ (P, Dp) matmul per step.
    x = patches_ref[...].reshape(bt * n, p)
    emb = jnp.dot(x, w_ref[...], preferred_element_type=jnp.float32)
    # Aligned, row-0, lane-dense store of the whole block (no cls row here).
    out_ref[...] = emb.reshape(bt, n, dp) + pos_bias_ref[...]


def patchify(x, patch_size):
    """Replicates torch unfold/permute/reshape ordering exactly. (B,C,H,W)->(B,N,P)."""
    B, C, H, W = x.shape
    p = patch_size
    hp, wp = H // p, W // p
    patches = x.reshape(B, C, hp, p, wp, p).transpose(0, 1, 2, 4, 3, 5)
    patches = patches.reshape(B, C, hp * wp, p * p)
    patches = patches.transpose(0, 2, 1, 3).reshape(B, hp * wp, C * p * p)
    return patches


def _pick_batch_tile(B, n_patches, target_rows=256):
    """Largest divisor of B with Bt*n_patches <= target_rows, keeping grid >= 2."""
    best = 1
    for bt in range(1, B + 1):
        if B % bt == 0 and bt * n_patches <= target_rows:
            best = bt
    # Keep the parallel grid axis >= 2 so both v7x TensorCores get work.
    if B >= 2 and B // best < 2:
        for bt in range(best, 0, -1):
            if B % bt == 0 and B // bt >= 2:
                best = bt
                break
    return best


def img2seq(x, weight, bias, cls_token, pos_embedding, *, patch_size):
    B, C, H, W = x.shape
    assert H % patch_size == 0 and W % patch_size == 0, "image not divisible by patch"
    n_patches = (H // patch_size) * (W // patch_size)
    patch_dim = patch_size * patch_size * C
    d_model = weight.shape[1]

    # Layout glue (pure JAX).  Cast to bf16: halves the patches HBM traffic and
    # feeds the MXU its native dtype.
    patches = patchify(x, patch_size).astype(jnp.bfloat16)          # (B, N, P)
    w_bf16 = weight.astype(jnp.bfloat16)                            # (P, D)

    # Fold bias + positional embedding once (amortized over the whole batch).
    pos2d = pos_embedding.reshape(n_patches + 1, d_model)
    pos_bias = pos2d[1:, :] + bias.reshape(1, d_model)              # (N, D)
    cls_row = cls_token.reshape(1, d_model) + pos2d[:1, :]          # (1, D)

    # Lane-dense output: pad D to a multiple of 128 (no-op for D=768).
    d_pad = ((d_model + 127) // 128) * 128
    if d_pad != d_model:
        w_bf16 = jnp.pad(w_bf16, ((0, 0), (0, d_pad - d_model)))
        pos_bias = jnp.pad(pos_bias, ((0, 0), (0, d_pad - d_model)))

    Bt = _pick_batch_tile(B, n_patches)
    grid = (B // Bt,)

    # Conservative VMEM budget (v7x: 64 MiB physical, 32 MiB scoped default).
    vmem_needed = (
        2 * Bt * n_patches * patch_dim * 2      # patches tile, double-buffered, bf16
        + 2 * Bt * n_patches * d_pad * 4        # output tile, double-buffered, f32
        + patch_dim * d_pad * 2                 # weight (resident), bf16
        + n_patches * d_pad * 4                 # pos+bias (resident), f32
    )
    vmem_limit = None
    if vmem_needed > 32 * 1024 * 1024:
        vmem_limit = min(64 * 1024 * 1024, int(vmem_needed * 5 // 4))

    out = pl.pallas_call(
        img2seq_kernel,
        out_shape=jax.ShapeDtypeStruct((B, n_patches, d_pad), jnp.float32),
        grid_spec=pltpu.PrefetchScalarGridSpec(
            num_scalar_prefetch=0,
            grid=grid,
            in_specs=[
                pl.BlockSpec((Bt, n_patches, patch_dim), lambda b: (b, 0, 0)),
                pl.BlockSpec((patch_dim, d_pad), lambda b: (0, 0)),
                pl.BlockSpec((n_patches, d_pad), lambda b: (0, 0)),
            ],
            out_specs=pl.BlockSpec((Bt, n_patches, d_pad), lambda b: (b, 0, 0)),
        ),
        compiler_params=pltpu.CompilerParams(
            dimension_semantics=("parallel",),
            vmem_limit_bytes=vmem_limit,
        ),
    )(patches, w_bf16, pos_bias)

    # Drop lane padding (no-op when d_model % 128 == 0).
    out = out[:, :, :d_model]

    # Prepend the cls row in the wrapper so in-kernel stores stay row-0 aligned.
    cls_rows = jnp.broadcast_to(cls_row[None, :, :], (B, 1, d_model))
    return jnp.concatenate([cls_rows, out], axis=1)


if __name__ == "__main__":
    # Small shapes consistent with the module's forward pass.
    B = 2
    n_channels = 4
    img_size = 16
    patch_size = 4
    d_model = 32
    n_patches = (img_size // patch_size) ** 2                    # 16
    patch_dim = patch_size * patch_size * n_channels             # 64

    key = jax.random.PRNGKey(0)
    kx, kw, kb, kc, kp = jax.random.split(key, 5)

    x = jax.random.normal(kx, (B, n_channels, img_size, img_size), jnp.float32)
    # nn.Linear(patch_dim, d_model): stored here pre-transposed as (P, D).
    weight = jax.random.normal(kw, (patch_dim, d_model), jnp.float32) * 0.02
    bias = jax.random.normal(kb, (d_model,), jnp.float32) * 0.02
    cls_token = jax.random.normal(kc, (1, 1, d_model), jnp.float32)
    pos_embedding = jax.random.normal(kp, (1, n_patches + 1, d_model), jnp.float32)

    out = img2seq(x, weight, bias, cls_token, pos_embedding,
                  patch_size=patch_size)
    out = jax.block_until_ready(out)

    # Pure-JAX f32 reference (same semantics as the torch forward).  The kernel
    # uses bf16 MXU inputs with f32 accumulation, so allow ~1e-2 tolerance.
    patches_ref = patchify(x, patch_size)
    emb_ref = patches_ref @ weight + bias
    ref = jnp.concatenate(
        [jnp.broadcast_to(cls_token, (B, 1, d_model)), emb_ref], axis=1
    ) + pos_embedding
    assert out.shape == (B, n_patches + 1, d_model)
    assert jnp.allclose(out, ref, atol=1e-2, rtol=1e-2), \
        float(jnp.max(jnp.abs(out - ref)))

    print("KERNEL_OK")
</pallas_src>

<mosaic_0001>
module attributes {stable_mosaic.version = 11 : i64} {
  func.func @img2seq_kernel(%arg0: i32, %arg1: memref<1x16x64xbf16, #tpu.memory_space<vmem>>, %arg2: memref<64x128xbf16, #tpu.memory_space<vmem>>, %arg3: memref<16x128xf32, #tpu.memory_space<vmem>>, %arg4: memref<1x16x128xf32, #tpu.memory_space<vmem>>) attributes {dimension_semantics = [#tpu.dimension_semantics<parallel>], iteration_bounds = array<i64: 2>, scalar_prefetch = 0 : i64, scratch_operands = 0 : i64, tpu.core_type = #tpu.core_type<tc>, window_params = [{transform_indices = @transform_0, window_bounds = array<i64: 1, 16, 64>}, {pipeline_mode = #tpu.pipeline_mode<synchronous>, transform_indices = @transform_1, window_bounds = array<i64: 64, 128>}, {pipeline_mode = #tpu.pipeline_mode<synchronous>, transform_indices = @transform_2, window_bounds = array<i64: 16, 128>}, {transform_indices = @transform_3, window_bounds = array<i64: 1, 16, 128>}]} {
    %c0 = arith.constant 0 : index
    %c0_0 = arith.constant 0 : index
    %c0_1 = arith.constant 0 : index
    %0 = vector.load %arg1[%c0, %c0_0, %c0_1] : memref<1x16x64xbf16, #tpu.memory_space<vmem>>, vector<1x16x64xbf16>
    %1 = vector.shape_cast %0 : vector<1x16x64xbf16> to vector<16x64xbf16>
    %c0_2 = arith.constant 0 : index
    %c0_3 = arith.constant 0 : index
    %2 = vector.load %arg2[%c0_2, %c0_3] : memref<64x128xbf16, #tpu.memory_space<vmem>>, vector<64x128xbf16>
    %cst = arith.constant dense<0.000000e+00> : vector<16x128xf32>
    %3 = tpu.matmul %1, %2, %cst {dimension_numbers = #tpu.dot_dimension_numbers<[1], [0], [0], [1], [0, 0, 1, 1], [], []>} : vector<16x64xbf16>, vector<64x128xbf16>, vector<16x128xf32> -> vector<16x128xf32>
    %4 = vector.shape_cast %3 : vector<16x128xf32> to vector<1x16x128xf32>
    %c0_4 = arith.constant 0 : index
    %c0_5 = arith.constant 0 : index
    %5 = vector.load %arg3[%c0_4, %c0_5] : memref<16x128xf32, #tpu.memory_space<vmem>>, vector<16x128xf32>
    %6 = vector.shape_cast %5 : vector<16x128xf32> to vector<1x16x128xf32>
    %7 = arith.addf %4, %6 : vector<1x16x128xf32>
    %c0_6 = arith.constant 0 : index
    %c0_7 = arith.constant 0 : index
    %c0_8 = arith.constant 0 : index
    %8 = vector.load %arg4[%c0_6, %c0_7, %c0_8] : memref<1x16x128xf32, #tpu.memory_space<vmem>>, vector<1x16x128xf32>
    tpu.vector_store %arg4[%c0_6, %c0_7, %c0_8], %7 {strides = array<i32>} : memref<1x16x128xf32, #tpu.memory_space<vmem>>, vector<1x16x128xf32>,
    return
  }
  func.func @transform_0(%arg0: i32) -> (i32, i32, i32) {
    %c0_i32 = arith.constant 0 : i32
    %c0_i32_0 = arith.constant 0 : i32
    %c0_i32_1 = arith.constant 0 : i32
    return %arg0, %c0_i32, %c0_i32_0 : i32, i32, i32
  }
  func.func @transform_1(%arg0: i32) -> (i32, i32) {
    %c0_i32 = arith.constant 0 : i32
    %c0_i32_0 = arith.constant 0 : i32
    %c0_i32_1 = arith.constant 0 : i32
    return %c0_i32, %c0_i32_0 : i32, i32
  }
  func.func @transform_2(%arg0: i32) -> (i32, i32) {
    %c0_i32 = arith.constant 0 : i32
    %c0_i32_0 = arith.constant 0 : i32
    %c0_i32_1 = arith.constant 0 : i32
    return %c0_i32, %c0_i32_0 : i32, i32
  }
  func.func @transform_3(%arg0: i32) -> (i32, i32, i32) {
    %c0_i32 = arith.constant 0 : i32
    %c0_i32_0 = arith.constant 0 : i32
    %c0_i32_1 = arith.constant 0 : i32
    return %arg0, %c0_i32, %c0_i32_0 : i32, i32, i32
  }
}

</mosaic_0001>

<bundles_post_ra>
// kernel: tpu_custom_call.1
= control target key start
LH: loop header
LB: loop body
LE: loop exit
PB: predicated region body
PF: predicated region fallthrough
CT: control target
= control target key end

     0   :  { %8 = vsyncpa [#allocation3], 0  ;;  %s969_s0 = inlined_call_operand.hbm [shape: bf16[2,16,64], index: 0, kind: input, shape index: {}]   ;;  %s970_s1 = inlined_call_operand.hbm [shape: bf16[64,128], index: 1, kind: input, shape index: {}]   ;;  %s971_s2 = inlined_call_operand.hbm [shape: f32[16,128], index: 2, kind: input, shape index: {}]   ;;  %s972_s3 = inlined_call_operand.hbm [shape: f32[2,16,128], index: 3, kind: output, shape index: {}]  }
   0x1   :  { %10 = vsyncpa [#allocation3 + $0x1], 0 }
   0x2   :  { %11 = vsyncpa [#allocation6], 0 }
   0x3   :  { %12 = vsyncpa [#allocation4], 0 }
   0x4   :  { %14 = vsyncpa [#allocation4 + $0x1], 0  ;;  %s728_s12 = smov 0   ;;  %s730_s13 = smov 0  }
   0x5   :  { %s732_s14 = smov 0   ;;  %s734_s15 = smov 0  }
   0x6 LB: > { %s749_s16 = sadd.s32 4294967295, %s694_s15   ;;  %s415_s17 = sadd.s32 4294967294, %s694_s15   ;;  %s694_s15 = sphi %s734_s15, %s992_s15   ;;  %s690_s14 = sphi %s732_s14, %s991_s14   ;;  %s686_s13 = sphi %s730_s13, %s990_s13   ;;  %s682_s12 = sphi %s728_s12, %s989_s12  }
   0x7   : > { %p40_p0 = scmp.ne.s32.totalorder %s686_s13, %s682_s12  ;;  %p973_p1 = scmp.eq.s32.totalorder %s749_s16, 0 }
   0x8   : > { %p112_p3 = scmp.eq.s32.totalorder %s415_s17, 1  ;;  %p416_p5 = scmp.ge.s32.totalorder %s694_s15, 1 }
   0x9   : > { %p758_p4 = por %p973_p1, %p40_p0  ;;  %p119_p7 = scmp.lt.s32.totalorder %s694_s15, 3 }
   0xa   : > { %p763_p6 = por %p112_p3, %p40_p0  ;;  %s696_s21 = smov [#allocation5]  }
   0xb   : > { %s976_s18 = scalar_select %p758_p4, 1, 0 }
   0xc   : > { %s977_s19 = scalar_select %p763_p6, 1, 0 }
   0xd   : > { %p768_p8 = pnand %p416_p5, %p119_p7  ;;  %s131_s22 = sshll.u32 %s696_s21, 4  ;;  %s772_s22 = int_to_ptr.vmem [resolvable:$true] %s131_s22 }
   0xe   : > { %s697_s24 = smov [#allocation7]   ;;  %s538_s28 = scalar_lea.hbm %s970_s1, 512 }
   0xf   : > { %p470_p9 = pneg %p768_p8  ;;  %s144_s25 = sshll.u32 %s697_s24, 4  ;;  %s783_s25 = int_to_ptr.vmem [resolvable:$true] %s144_s25 }
  0x10   : > { %p539_p12 = scmp.ne.s32.totalorder %s970_s1, %s538_s28  ;;  %p545_p5 = scmp.lt.u32.totalorder %s538_s28, %s970_s1 }
  0x11   : > { %p779_p11 = pnand %p470_p9, %p973_p1 }
  0x13   : > { %p540_p13 = pneg %p779_p11 }
  0x15   : > { %p541_p0 = pnand %p540_p13, %p539_p12 }
  0x17   : > { %p542_p3 = pneg %p541_p0 }
  0x19   : > { %p547_p7 = pnand %p545_p5, %p542_p3 }
  0x1b   : > { %550 = shalt.err (!%p547_p7)
}
  0x1c   : > { %s551_s6 = scalar_lea.vmem %s772_s22, 512  ;;  %p559_p2 = scmp.lt.s32.totalorder %s772_s22, %s772_s22 }
  0x1d   : > { %p552_p9 = scmp.ne.s32.totalorder %s772_s22, %s551_s6  ;;  %p560_p12 = scmp.lt.s32.totalorder %s551_s6, %s551_s6 }
  0x1f   : > { %p554_p10 = pnand %p552_p9, %p540_p13  ;;  %p561_p0 = por %p560_p12, %p559_p2 }
  0x21   : > { %p555_p1 = pneg %p554_p10 }
  0x23   : > { %p562_p6 = pnand %p561_p0, %p555_p1 }
  0x25   : > { %565 = shalt.err (!%p562_p6)
}
  0x26   : > { %s698_s7 = smov 64   ;;  %s699_s8 = smov 4  }
  0x27   : > { %473 = dma.hbm_to_vmem [thread:$0]  (!%p779_p11), %s970_s1, 512, %s772_s22, [#allocation6], %s698_s7, %s698_s7, %s699_s8  }
  0x28   : > { %s566_s21 = scalar_lea.hbm %s971_s2, 256 }
  0x29   : > { %p567_p1 = scmp.ne.s32.totalorder %s971_s2, %s566_s21  ;;  %p573_p10 = scmp.lt.u32.totalorder %s566_s21, %s971_s2 }
  0x2b   : > { %p569_p2 = pnand %p567_p1, %p540_p13 }
  0x2d   : > { %p570_p6 = pneg %p569_p2 }
  0x2f   : > { %p575_p3 = pnand %p573_p10, %p570_p6 }
  0x31   : > { %578 = shalt.err (!%p575_p3)
}
  0x32   : > { %s579_s22 = scalar_lea.vmem %s783_s25, 256  ;;  %p587_p12 = scmp.lt.s32.totalorder %s783_s25, %s783_s25 }
  0x33   : > { %p580_p5 = scmp.ne.s32.totalorder %s783_s25, %s579_s22  ;;  %p588_p0 = scmp.lt.s32.totalorder %s579_s22, %s579_s22 }
  0x35   : > { %p582_p7 = pnand %p580_p5, %p540_p13  ;;  %p589_p1 = por %p588_p0, %p587_p12 }
  0x37   : > { %p583_p9 = pneg %p582_p7 }
  0x39   : > { %p590_p2 = pnand %p589_p1, %p583_p9 }
  0x3b   : > { %593 = shalt.err (!%p590_p2)
}
  0x3c   : > { %s700_s29 = smov 128   ;;  %s701_s30 = smov 8  }
  0x3d   : > { %476 = dma.hbm_to_vmem [thread:$0]  (!%p779_p11), %s971_s2, 256, %s783_s25, [#allocation6], %s700_s29, %s700_s29, %s701_s30  }
  0x3e   : > { %s841_s6 = sadd.s32 1, %s694_s15   ;;  %s27_s10 = sadd.s32 1, %s690_s14 }
  0x3f   : > { %s24_s9 = ssub.s32 %s694_s15, %s841_s6  ;;  %p34_p6 = scmp.ne.s32.totalorder %s690_s14, %s686_s13 }
  0x40   : > { %p25_p13 = scmp.eq.s32.totalorder %s24_s9, 0  ;;  %p35_p10 = scmp.eq.s32.totalorder %s694_s15, 0 }
  0x41   : > { %p980_p5 = scmp.eq.s32.totalorder %s749_s16, 1  ;;  %p487_p9 = scmp.lt.s32.totalorder %s694_s15, 2 }
  0x42   : > { %s850_s11 = scalar_select %p25_p13, %s690_s14, %s27_s10  }
  0x43   : > { %p36_p3 = por %p35_p10, %p34_p6  ;;  %p854_p7 = por %p980_p5, %p34_p6 }
  0x44   : > { %s158_s23 = sand.u32 1, %s690_s14   ;;  %s439_s25 = sshll.u32 %s694_s15, 7 }
  0x45   : > { %s981_s17 = scalar_select %p854_p7, 1, 0 }
  0x46   : > { %s420_s21 = sshll.u32 %s158_s23, 3  ;;  %s864_s27 = scalar_lea.hbm %s969_s0, %s439_s25 }
  0x47   : > { %s162_s28 = scalar_lea.vmem [#allocation2], %s420_s21  ;;  %p868_p11 = pnand %p487_p9, %p36_p3 }
  0x48   : > { %s169_s22 = sshll.u32 %s162_s28, 4  ;;  %s872_s30 = scalar_lea.sflag [#allocation3], %s158_s23  ;;  %s866_s22 = int_to_ptr.vmem [resolvable:$true] %s169_s22 }
  0x49   : > { %s594_s4 = scalar_lea.hbm %s864_s27, 128  ;;  %p596_p0 = pneg %p868_p11 }
  0x4a   : > { %p595_p12 = scmp.ne.s32.totalorder %s864_s27, %s594_s4  ;;  %s599_s10 = scalar_lea.hbm %s969_s0, 256 }
  0x4b   : > { %p600_p13 = scmp.lt.u32.totalorder %s864_s27, %s969_s0  ;;  %p601_p6 = scmp.lt.u32.totalorder %s599_s10, %s594_s4 }
  0x4c   : > { %p597_p1 = pnand %p596_p0, %p595_p12  ;;  %p603_p3 = scmp.lt.u32.totalorder %s594_s4, %s864_s27 }
  0x4d   : > { %p602_p10 = por %p601_p6, %p600_p13 }
  0x4e   : > { %p598_p2 = pneg %p597_p1 }
  0x4f   : > { %p604_p5 = por %p603_p3, %p602_p10 }
  0x51   : > { %p605_p9 = pnand %p604_p5, %p598_p2 }
  0x53   : > { %608 = shalt.err (!%p605_p9)
}
  0x54   : > { %s609_s23 = scalar_lea.vmem %s866_s22, 128  ;;  %s702_s24 = smov [#allocation2]  }
  0x55   : > { %p610_p12 = scmp.ne.s32.totalorder %s866_s22, %s609_s23  ;;  %s614_s26 = sshll.u32 %s702_s24, 4  ;;  %s615_s26 = int_to_ptr.vmem [resolvable:$false] %s614_s26 }
  0x56   : > { %s616_s28 = scalar_lea.vmem %s615_s26, 256  ;;  %p617_p4 = scmp.lt.s32.totalorder %s866_s22, %s615_s26 }
  0x57   : > { %p612_p1 = pnand %p610_p12, %p596_p0  ;;  %p618_p13 = scmp.lt.s32.totalorder %s616_s28, %s609_s23 }
  0x59   : > { %p613_p7 = pneg %p612_p1  ;;  %p619_p6 = por %p618_p13, %p617_p4 }
  0x5b   : > { %p620_p10 = pnand %p619_p6, %p613_p7 }
  0x5d   : > { %623 = shalt.err (!%p620_p10)
}
  0x5e   : > { %480 = dma.hbm_to_vmem [thread:$0]  (!%p868_p11), %s864_s27, 128, %s866_s22, %s872_s30, %s698_s7, %s698_s7, %s699_s8  }
  0x5f   : > { %181 = sbr.rel (%p768_p8) target bundleno = 354 (0x162), region = 32  ;;  %s906_s4 = sand.u32 (!%p768_p8), 1, %s686_s13  }
  0x60   : > { %s424_s5 = sshll.u32 (!%p768_p8), %s906_s4, 3  ;;  %s184_s9 = scalar_lea.sflag (!%p768_p8), [#allocation3], %s906_s4 }
  0x61   : > { %s187_s10 = scalar_lea.vmem (!%p768_p8), [#allocation2], %s424_s5  ;;  %p983_p4 = scmp.ne.s32.totalorder (!%p768_p8), %s976_s18, 0 }
  0x66   : > { %669 = dma.done.wait (%p983_p4), %s184_s9, 128  }
  0x67   : > { %671 = vsyncadd (%p983_p4), %s184_s9, 4294967168  ;;  %p984_p7 = scmp.eq.s32.totalorder %s749_s16, 0 }
  0x69   : > { %673 = dma.done.wait (%p984_p7), [#allocation6], 768   ;;  %p985_p11 = pmov %p984_p7 }
  0x6a   : > { %v703_v0 = vmov 0.0   ;;  %vm704_vm0 = vmmov 0   ;;  %v533_v1 = vld [vmem:[#allocation5] sm:$0xff]   ;;  %v534_v2 = vld [vmem:[#allocation5 + $0x8] sm:$0xff]   ;;  %v535_v3 = vld [vmem:[#allocation5 + $0x10] sm:$0xff]   ;;  %vm258_vm1 = vcmask 523264  }
  0x6b   : > { %675 = vsyncadd (%p985_p11), [#allocation6], 4294966528  ;;  %446 = vmatprep.subr.bf16.mxu0 %v703_v0  ;;  %454 = vmatprep.mubr.msk.bf16.mxu0 %vm704_vm0, %v703_v0  ;;  %v536_v4 = vld [vmem:[#allocation5 + $0x18] sm:$0xff]   ;;  %s427_s18 = sshll.u32 %s906_s4, 4  ;;  %v303_v6 = vld [vmem:[#allocation7] sm:$0xff]  ;;  %s440_s8 = sshll.u32 %s749_s16, 8 }
  0x6c   : > { %447 = vmatpush3.bf16.msra.mxu0 %v533_v1  ;;  %v537_v5 = vld [vmem:[%s187_s10] sm:$0xff]   ;;  %s217_s20 = scalar_lea.vmem [#allocation8], %s427_s18  ;;  %v304_v8 = vld [vmem:[#allocation7 + $0x8] sm:$0xff]  ;;  %s925_s29 = scalar_lea.hbm %s972_s3, %s440_s8 }
  0x6d   : > { %448 = vmatprep.subr.bf16.mxu0 %v703_v0  ;;  %s323_s7 = sshll.u32 %s217_s20, 4  ;;  %s310_s16 = scalar_lea.sflag [#allocation4], %s906_s4  ;;  %s920_s7 = int_to_ptr.vmem [resolvable:$true] %s323_s7 }
  0x6e   : > { %s624_s30 = scalar_lea.vmem %s920_s7, 256  ;;  %p986_p0 = scmp.ne.s32.totalorder %s981_s17, 0 }
  0x6f   : > { %p625_p8 = scmp.ne.s32.totalorder %s920_s7, %s624_s30  ;;  %s705_s21 = smov [#allocation8]  }
  0x70   : > { %449 = vmatpush3.bf16.msra.mxu0 %v534_v2  ;;  %s628_s25 = sshll.u32 %s705_s21, 4  ;;  %s629_s25 = int_to_ptr.vmem [resolvable:$false] %s628_s25 }
  0x71   : > { %450 = vmatprep.subr.bf16.mxu0 %v703_v0  ;;  %p626_p2 = pnand %p625_p8, %p986_p0  ;;  %s630_s23 = scalar_lea.vmem %s629_s25, 512 }
  0x72   : > { %p631_p5 = scmp.lt.s32.totalorder %s920_s7, %s629_s25  ;;  %p632_p9 = scmp.lt.s32.totalorder %s630_s23, %s624_s30 }
  0x73   : > { %p627_p3 = pneg %p626_p2 }
  0x74   : > { %451 = vmatpush3.bf16.msra.mxu0 %v535_v3  ;;  %p633_p12 = por %p632_p9, %p631_p5 }
  0x75   : > { %452 = vmatprep.subr.bf16.mxu0 %v703_v0 }
  0x76   : > { %p634_p1 = pnand %p633_p12, %p627_p3 }
  0x78   : > { %453 = vmatpush3.bf16.msra.mxu0 %v536_v4 }
  0x7b   : > { %455 = vmatmul.mubr.msk.bf16.vlgmr.msra.gmra.mrb[0].mxu0 %vm258_vm1, %v537_v5 }
 0x14e   : > { %v296_v7 = vpop.f32.mrb[0].mxu0 }
 0x14f   : > { %v305_v9 = vadd.f32 %v303_v6, %v296_v7  ;;  %v456_v10 = vpop.f32.mrb[1].mxu0 }
 0x150   : > { %v299_v11 = vpop.f32.mrb[2].mxu0 }
 0x151   : > { %307 = vst [vmem:[%s217_s20] sm:$0xff] %v305_v9  ;;  %v306_v12 = vadd.f32 %v304_v8, %v299_v11  ;;  %v457_v13 = vpop.f32.mrb[3].mxu0 }
 0x153   : > { %308 = vst [vmem:[%s217_s20 + $0x8] sm:$0xff] %v306_v12 }
 0x154   : > { %637 = shalt.err (!%p634_p1)
}
 0x155   : > { %s638_s24 = scalar_lea.hbm %s925_s29, 256  ;;  %s642_s5 = scalar_lea.hbm %s972_s3, 512 }
 0x156   : > { %p639_p13 = scmp.ne.s32.totalorder %s925_s29, %s638_s24  ;;  %p643_p4 = scmp.lt.u32.totalorder %s925_s29, %s972_s3 }
 0x157   : > { %p644_p7 = scmp.lt.u32.totalorder %s642_s5, %s638_s24  ;;  %p646_p8 = scmp.lt.u32.totalorder %s638_s24, %s925_s29 }
 0x158   : > { %p640_p6 = pnand %p639_p13, %p986_p0 }
 0x159   : > { %p645_p11 = por %p644_p7, %p643_p4 }
 0x15a   : > { %p641_p10 = pneg %p640_p6 }
 0x15b   : > { %p647_p2 = por %p646_p8, %p645_p11 }
 0x15d   : > { %p648_p3 = pnand %p647_p2, %p641_p10 }
 0x15f   : > { %651 = shalt.err (!%p648_p3)
}
 0x160   : > { %s706_s18 = smov 128   ;;  %s707_s20 = smov 8  }
 0x161   : > { %468 = dma.vmem_to_hbm [thread:$0]  (%p986_p0), %s920_s7, 256, %s925_s29, %s310_s16, %s706_s18, %s706_s18, %s707_s20  }
 0x162 PF: > { %s338_s8 = sand.u32 1, %s682_s12   ;;  %p987_p5 = scmp.ne.s32.totalorder %s977_s19, 0 }
 0x163   : > { %p988_p9 = scmp.ge.s32.totalorder %s694_s15, 2  ;;  %s339_s27 = scalar_lea.sflag [#allocation4], %s338_s8 }
 0x165   : > { %p482_p12 = pnand %p988_p9, %p987_p5 }
 0x167   : > { %677 = dma.done.wait (!%p482_p12), %s339_s27, 256  }
 0x168   : > { %679 = vsyncadd (!%p482_p12), %s339_s27, 4294967040  ;;  %p17_p1 = scmp.ge.s32.totalorder %s841_s6, 4   ;;  %s989_s12 = smov %s686_s13 }
 0x169   : > { %s990_s13 = smov %s690_s14  ;;  %s991_s14 = smov %s850_s11 }
 0x16a   : > { %s992_s15 = smov %s841_s6  ;;  %19 = sbr.rel (!%p17_p1) target bundleno = 6 (0x6), region = 85 }
 0x171   :  { %344 = vsyncpa [#allocation3], 1 }
 0x172   :  { %346 = vsyncpa [#allocation3 + $0x1], 1 }
 0x173   :  { %347 = vsyncpa [#allocation6], 1 }
 0x174   :  { %348 = vsyncpa [#allocation4], 1 }
 0x175   :  { %350 = vsyncpa [#allocation4 + $0x1], 1 }

</bundles_post_ra>
